<compile_context>
chip_gen: v7x
topology: tpu7x:2x2x1
jax: 0.10.0
libtpu: 0.0.40
codegen_flags: <defaults>
</compile_context>

<pallas_src>
import jax
import jax.numpy as jnp
import numpy as np
from jax.experimental import pallas as pl
from jax.experimental.pallas import tpu as pltpu


def lstm_fc_kernel(x_ref, w_ih_ref, w_hh_ref, b_ref, w_fc_ref, b_fc_ref,
                   out_ref, h_ref, c_ref):
    """Full LSTM recurrence + FC head in one kernel invocation.

    x_ref    : (B, T, F)   batch-first input
    w_ih_ref : (F, 4H)
    w_hh_ref : (H, 4H)
    b_ref    : (1, 4H)
    w_fc_ref : (1, H)      fc weight as a row vector
    b_fc_ref : (1, 1)
    out_ref  : (B, 1)      fc(h_T)
    h_ref    : (B, T, H)   hidden states per step (batch-first)
    c_ref    : (B, T, H)   cell states per step (batch-first)
    """
    B, T, F = x_ref.shape
    H = w_hh_ref.shape[0]

    # Hoist the recurrent weight load out of the unrolled loop.
    w_hh = w_hh_ref[...]

    # ---- Prologue: input projection for the whole sequence, one MXU push ----
    #   xw[b, t, :] = x[b, t, :] @ W_ih + bias
    # Collapsing (B, T) keeps the lane dim and the native 8-sublane tiling
    # (T == 8), so both reshapes are layout no-ops.
    x2d = x_ref[...].reshape(B * T, F)
    xw = (jnp.dot(x2d, w_ih_ref[...], preferred_element_type=jnp.float32)
          + b_ref[...]).reshape(B, T, 4 * H)

    h = jnp.zeros((B, H), jnp.float32)
    c = jnp.zeros((B, H), jnp.float32)

    # ---- Recurrence: serial chain of T tiny steps (fully unrolled) ----------
    # T is small and static; a Python loop yields a straight-line trace with
    # only static slice/store offsets (same effect as fori_loop(unroll=True)
    # but without dynamic indices on the middle dims).
    for t in range(T):
        # One MXU push per step; x-projection and bias already folded into xw.
        gates = xw[:, t, :] + jnp.dot(h, w_hh,
                                      preferred_element_type=jnp.float32)

        # Gate order in the reference module: f, i, o, g.
        # Single sigmoid over the contiguous f/i/o slab, single tanh over g.
        sig_fio = jax.nn.sigmoid(gates[:, :3 * H])
        g = jnp.tanh(gates[:, 3 * H:])
        f = sig_fio[:, 0 * H:1 * H]
        i = sig_fio[:, 1 * H:2 * H]
        o = sig_fio[:, 2 * H:3 * H]

        c = f * c + i * g
        h = o * jnp.tanh(c)

        # Stores are off the dependency chain; batch-first layout, static t.
        h_ref[:, t, :] = h
        c_ref[:, t, :] = c

    # ---- FC head on the last hidden state: VPU mul + lane reduce ------------
    out_ref[...] = (jnp.sum(h * w_fc_ref[...], axis=1, keepdims=True)
                    + b_fc_ref[...])


def model_forward(x, w_ih, w_hh, bias, w_fc, b_fc):
    """x: (B, T, F) float32. Returns (out (B,1), h_n (B,T,H), c_n (B,T,H))."""
    B, T, F = x.shape
    H = w_hh.shape[0]

    vmem = pl.BlockSpec(memory_space=pltpu.MemorySpace.VMEM)
    out, h_n, c_n = pl.pallas_call(
        lstm_fc_kernel,
        out_shape=(
            jax.ShapeDtypeStruct((B, 1), jnp.float32),
            jax.ShapeDtypeStruct((B, T, H), jnp.float32),
            jax.ShapeDtypeStruct((B, T, H), jnp.float32),
        ),
        in_specs=[vmem] * 6,
        out_specs=(vmem, vmem, vmem),
    )(x, w_ih, w_hh, bias.reshape(1, 4 * H), w_fc.reshape(1, H),
      b_fc.reshape(1, 1))
    return out, h_n, c_n


def reference_forward(x, w_ih, w_hh, bias, w_fc, b_fc):
    """Pure-JAX reference mirroring the PyTorch module (correctness check)."""
    B, T, F = x.shape
    H = w_hh.shape[0]
    h = jnp.zeros((B, H), jnp.float32)
    c = jnp.zeros((B, H), jnp.float32)
    hs, cs = [], []
    for t in range(T):
        gates = h @ w_hh + x[:, t, :] @ w_ih + bias[None, :]
        f, i, o, g = jnp.split(gates, 4, axis=1)
        c = jax.nn.sigmoid(f) * c + jax.nn.sigmoid(i) * jnp.tanh(g)
        h = jax.nn.sigmoid(o) * jnp.tanh(c)
        hs.append(h)
        cs.append(c)
    h_n = jnp.stack(hs, axis=1)
    c_n = jnp.stack(cs, axis=1)
    out = h_n[:, -1, :] @ w_fc + b_fc[None, :]
    return out, h_n, c_n


if __name__ == "__main__":
    INPUT_SIZE, HIDDEN_SIZE = 5, 10
    B, T = 2, 8

    key = jax.random.PRNGKey(0)
    k_x, k_ih, k_fcw, k_fcb = jax.random.split(key, 4)

    # Deterministic parameter init (shapes match the PyTorch module).
    # weight_ih: orthogonal (input_size, 4*hidden).
    a = jax.random.normal(k_ih, (4 * HIDDEN_SIZE, INPUT_SIZE), jnp.float32)
    q, _ = jnp.linalg.qr(a)                          # (40, 5) orthonormal cols
    w_ih = q.T.astype(jnp.float32)                   # (5, 40)
    # weight_hh: eye(hidden).repeat(1, 4) -> (10, 40)
    w_hh = jnp.tile(jnp.eye(HIDDEN_SIZE, dtype=jnp.float32), (1, 4))
    bias = jnp.zeros((4 * HIDDEN_SIZE,), jnp.float32)
    # fc: Linear(10, 1)
    w_fc = (jax.random.uniform(k_fcw, (HIDDEN_SIZE, 1), jnp.float32) - 0.5) * 0.6
    b_fc = (jax.random.uniform(k_fcb, (1,), jnp.float32) - 0.5) * 0.6

    x = jax.random.normal(k_x, (B, T, INPUT_SIZE), jnp.float32)

    out, h_n, c_n = jax.block_until_ready(
        model_forward(x, w_ih, w_hh, bias, w_fc, b_fc)
    )

    out_r, h_r, c_r = reference_forward(x, w_ih, w_hh, bias, w_fc, b_fc)
    np.testing.assert_allclose(np.asarray(out), np.asarray(out_r), rtol=1e-5, atol=1e-5)
    np.testing.assert_allclose(np.asarray(h_n), np.asarray(h_r), rtol=1e-5, atol=1e-5)
    np.testing.assert_allclose(np.asarray(c_n), np.asarray(c_r), rtol=1e-5, atol=1e-5)

    assert out.shape == (B, 1)
    assert h_n.shape == (B, T, HIDDEN_SIZE) and c_n.shape == (B, T, HIDDEN_SIZE)
    print("KERNEL_OK")
</pallas_src>

<mosaic_0001>
module attributes {stable_mosaic.version = 11 : i64} {
  func.func @lstm_fc_kernel(%arg0: memref<2x8x5xf32, #tpu.memory_space<vmem>>, %arg1: memref<5x40xf32, #tpu.memory_space<vmem>>, %arg2: memref<10x40xf32, #tpu.memory_space<vmem>>, %arg3: memref<1x40xf32, #tpu.memory_space<vmem>>, %arg4: memref<1x10xf32, #tpu.memory_space<vmem>>, %arg5: memref<1x1xf32, #tpu.memory_space<vmem>>, %arg6: memref<2x1xf32, #tpu.memory_space<vmem>>, %arg7: memref<2x8x10xf32, #tpu.memory_space<vmem>>, %arg8: memref<2x8x10xf32, #tpu.memory_space<vmem>>) attributes {dimension_semantics = [], scalar_prefetch = 0 : i64, scratch_operands = 0 : i64, tpu.core_type = #tpu.core_type<tc>} {
    %c0 = arith.constant 0 : index
    %c0_0 = arith.constant 0 : index
    %0 = vector.load %arg2[%c0, %c0_0] : memref<10x40xf32, #tpu.memory_space<vmem>>, vector<10x40xf32>
    %c0_1 = arith.constant 0 : index
    %c0_2 = arith.constant 0 : index
    %c0_3 = arith.constant 0 : index
    %1 = vector.load %arg0[%c0_1, %c0_2, %c0_3] : memref<2x8x5xf32, #tpu.memory_space<vmem>>, vector<2x8x5xf32>
    %2 = vector.shape_cast %1 : vector<2x8x5xf32> to vector<16x5xf32>
    %c0_4 = arith.constant 0 : index
    %c0_5 = arith.constant 0 : index
    %3 = vector.load %arg1[%c0_4, %c0_5] : memref<5x40xf32, #tpu.memory_space<vmem>>, vector<5x40xf32>
    %cst = arith.constant dense<0.000000e+00> : vector<16x40xf32>
    %4 = tpu.matmul %2, %3, %cst {dimension_numbers = #tpu.dot_dimension_numbers<[1], [0], [0], [1], [0, 0, 1, 1], [], []>} : vector<16x5xf32>, vector<5x40xf32>, vector<16x40xf32> -> vector<16x40xf32>
    %c0_6 = arith.constant 0 : index
    %c0_7 = arith.constant 0 : index
    %5 = vector.load %arg3[%c0_6, %c0_7] : memref<1x40xf32, #tpu.memory_space<vmem>>, vector<1x40xf32>
    %6 = vector.broadcast %5 : vector<1x40xf32> to vector<16x40xf32>
    %7 = arith.addf %4, %6 : vector<16x40xf32>
    %8 = vector.shape_cast %7 : vector<16x40xf32> to vector<2x8x40xf32>
    %cst_8 = arith.constant 0.000000e+00 : f32
    %9 = vector.broadcast %cst_8 : f32 to vector<2x10xf32>
    %cst_9 = arith.constant 0.000000e+00 : f32
    %10 = vector.broadcast %cst_9 : f32 to vector<2x10xf32>
    %11 = vector.extract_strided_slice %8 {offsets = [0, 0, 0], sizes = [2, 1, 40], strides = [1, 1, 1]} : vector<2x8x40xf32> to vector<2x1x40xf32>
    %12 = vector.shape_cast %11 : vector<2x1x40xf32> to vector<2x40xf32>
    %cst_10 = arith.constant dense<0.000000e+00> : vector<2x40xf32>
    %13 = tpu.matmul %9, %0, %cst_10 {dimension_numbers = #tpu.dot_dimension_numbers<[1], [0], [0], [1], [0, 0, 1, 1], [], []>} : vector<2x10xf32>, vector<10x40xf32>, vector<2x40xf32> -> vector<2x40xf32>
    %14 = arith.addf %12, %13 : vector<2x40xf32>
    %15 = vector.extract_strided_slice %14 {offsets = [0, 0], sizes = [2, 30], strides = [1, 1]} : vector<2x40xf32> to vector<2x30xf32>
    %16 = arith.negf %15 : vector<2x30xf32>
    %17 = math.exp %16 : vector<2x30xf32>
    %cst_11 = arith.constant 1.000000e+00 : f32
    %18 = vector.broadcast %cst_11 : f32 to vector<2x30xf32>
    %19 = arith.addf %18, %17 : vector<2x30xf32>
    %20 = arith.divf %18, %19 : vector<2x30xf32>
    %21 = vector.extract_strided_slice %14 {offsets = [0, 30], sizes = [2, 10], strides = [1, 1]} : vector<2x40xf32> to vector<2x10xf32>
    %22 = math.tanh %21 : vector<2x10xf32>
    %23 = vector.extract_strided_slice %20 {offsets = [0, 0], sizes = [2, 10], strides = [1, 1]} : vector<2x30xf32> to vector<2x10xf32>
    %24 = vector.extract_strided_slice %20 {offsets = [0, 10], sizes = [2, 10], strides = [1, 1]} : vector<2x30xf32> to vector<2x10xf32>
    %25 = vector.extract_strided_slice %20 {offsets = [0, 20], sizes = [2, 10], strides = [1, 1]} : vector<2x30xf32> to vector<2x10xf32>
    %26 = arith.mulf %23, %10 : vector<2x10xf32>
    %27 = arith.mulf %24, %22 : vector<2x10xf32>
    %28 = arith.addf %26, %27 : vector<2x10xf32>
    %29 = math.tanh %28 : vector<2x10xf32>
    %30 = arith.mulf %25, %29 : vector<2x10xf32>
    %c0_12 = arith.constant 0 : index
    %c0_13 = arith.constant 0 : index
    %c0_14 = arith.constant 0 : index
    %31 = vector.load %arg7[%c0_12, %c0_13, %c0_14] : memref<2x8x10xf32, #tpu.memory_space<vmem>>, vector<2x1x10xf32>
    %32 = vector.shape_cast %31 : vector<2x1x10xf32> to vector<2x10xf32>
    %33 = vector.shape_cast %30 : vector<2x10xf32> to vector<2x1x10xf32>
    tpu.vector_store %arg7[%c0_12, %c0_13, %c0_14], %33 {strides = array<i32>} : memref<2x8x10xf32, #tpu.memory_space<vmem>>, vector<2x1x10xf32>,
    %c0_15 = arith.constant 0 : index
    %c0_16 = arith.constant 0 : index
    %c0_17 = arith.constant 0 : index
    %34 = vector.load %arg8[%c0_15, %c0_16, %c0_17] : memref<2x8x10xf32, #tpu.memory_space<vmem>>, vector<2x1x10xf32>
    %35 = vector.shape_cast %34 : vector<2x1x10xf32> to vector<2x10xf32>
    %36 = vector.shape_cast %28 : vector<2x10xf32> to vector<2x1x10xf32>
    tpu.vector_store %arg8[%c0_15, %c0_16, %c0_17], %36 {strides = array<i32>} : memref<2x8x10xf32, #tpu.memory_space<vmem>>, vector<2x1x10xf32>,
    %37 = vector.extract_strided_slice %8 {offsets = [0, 1, 0], sizes = [2, 1, 40], strides = [1, 1, 1]} : vector<2x8x40xf32> to vector<2x1x40xf32>
    %38 = vector.shape_cast %37 : vector<2x1x40xf32> to vector<2x40xf32>
    %cst_18 = arith.constant dense<0.000000e+00> : vector<2x40xf32>
    %39 = tpu.matmul %30, %0, %cst_18 {dimension_numbers = #tpu.dot_dimension_numbers<[1], [0], [0], [1], [0, 0, 1, 1], [], []>} : vector<2x10xf32>, vector<10x40xf32>, vector<2x40xf32> -> vector<2x40xf32>
    %40 = arith.addf %38, %39 : vector<2x40xf32>
    %41 = vector.extract_strided_slice %40 {offsets = [0, 0], sizes = [2, 30], strides = [1, 1]} : vector<2x40xf32> to vector<2x30xf32>
    %42 = arith.negf %41 : vector<2x30xf32>
    %43 = math.exp %42 : vector<2x30xf32>
    %cst_19 = arith.constant 1.000000e+00 : f32
    %44 = vector.broadcast %cst_19 : f32 to vector<2x30xf32>
    %45 = arith.addf %44, %43 : vector<2x30xf32>
    %46 = arith.divf %44, %45 : vector<2x30xf32>
    %47 = vector.extract_strided_slice %40 {offsets = [0, 30], sizes = [2, 10], strides = [1, 1]} : vector<2x40xf32> to vector<2x10xf32>
    %48 = math.tanh %47 : vector<2x10xf32>
    %49 = vector.extract_strided_slice %46 {offsets = [0, 0], sizes = [2, 10], strides = [1, 1]} : vector<2x30xf32> to vector<2x10xf32>
    %50 = vector.extract_strided_slice %46 {offsets = [0, 10], sizes = [2, 10], strides = [1, 1]} : vector<2x30xf32> to vector<2x10xf32>
    %51 = vector.extract_strided_slice %46 {offsets = [0, 20], sizes = [2, 10], strides = [1, 1]} : vector<2x30xf32> to vector<2x10xf32>
    %52 = arith.mulf %49, %28 : vector<2x10xf32>
    %53 = arith.mulf %50, %48 : vector<2x10xf32>
    %54 = arith.addf %52, %53 : vector<2x10xf32>
    %55 = math.tanh %54 : vector<2x10xf32>
    %56 = arith.mulf %51, %55 : vector<2x10xf32>
    %c0_20 = arith.constant 0 : index
    %c1 = arith.constant 1 : index
    %c0_21 = arith.constant 0 : index
    %57 = vector.load %arg7[%c0_20, %c1, %c0_21] : memref<2x8x10xf32, #tpu.memory_space<vmem>>, vector<2x1x10xf32>
    %58 = vector.shape_cast %57 : vector<2x1x10xf32> to vector<2x10xf32>
    %59 = vector.shape_cast %56 : vector<2x10xf32> to vector<2x1x10xf32>
    tpu.vector_store %arg7[%c0_20, %c1, %c0_21], %59 {strides = array<i32>} : memref<2x8x10xf32, #tpu.memory_space<vmem>>, vector<2x1x10xf32>,
    %c0_22 = arith.constant 0 : index
    %c1_23 = arith.constant 1 : index
    %c0_24 = arith.constant 0 : index
    %60 = vector.load %arg8[%c0_22, %c1_23, %c0_24] : memref<2x8x10xf32, #tpu.memory_space<vmem>>, vector<2x1x10xf32>
    %61 = vector.shape_cast %60 : vector<2x1x10xf32> to vector<2x10xf32>
    %62 = vector.shape_cast %54 : vector<2x10xf32> to vector<2x1x10xf32>
    tpu.vector_store %arg8[%c0_22, %c1_23, %c0_24], %62 {strides = array<i32>} : memref<2x8x10xf32, #tpu.memory_space<vmem>>, vector<2x1x10xf32>,
    %63 = vector.extract_strided_slice %8 {offsets = [0, 2, 0], sizes = [2, 1, 40], strides = [1, 1, 1]} : vector<2x8x40xf32> to vector<2x1x40xf32>
    %64 = vector.shape_cast %63 : vector<2x1x40xf32> to vector<2x40xf32>
    %cst_25 = arith.constant dense<0.000000e+00> : vector<2x40xf32>
    %65 = tpu.matmul %56, %0, %cst_25 {dimension_numbers = #tpu.dot_dimension_numbers<[1], [0], [0], [1], [0, 0, 1, 1], [], []>} : vector<2x10xf32>, vector<10x40xf32>, vector<2x40xf32> -> vector<2x40xf32>
    %66 = arith.addf %64, %65 : vector<2x40xf32>
    %67 = vector.extract_strided_slice %66 {offsets = [0, 0], sizes = [2, 30], strides = [1, 1]} : vector<2x40xf32> to vector<2x30xf32>
    %68 = arith.negf %67 : vector<2x30xf32>
    %69 = math.exp %68 : vector<2x30xf32>
    %cst_26 = arith.constant 1.000000e+00 : f32
    %70 = vector.broadcast %cst_26 : f32 to vector<2x30xf32>
    %71 = arith.addf %70, %69 : vector<2x30xf32>
    %72 = arith.divf %70, %71 : vector<2x30xf32>
    %73 = vector.extract_strided_slice %66 {offsets = [0, 30], sizes = [2, 10], strides = [1, 1]} : vector<2x40xf32> to vector<2x10xf32>
    %74 = math.tanh %73 : vector<2x10xf32>
    %75 = vector.extract_strided_slice %72 {offsets = [0, 0], sizes = [2, 10], strides = [1, 1]} : vector<2x30xf32> to vector<2x10xf32>
    %76 = vector.extract_strided_slice %72 {offsets = [0, 10], sizes = [2, 10], strides = [1, 1]} : vector<2x30xf32> to vector<2x10xf32>
    %77 = vector.extract_strided_slice %72 {offsets = [0, 20], sizes = [2, 10], strides = [1, 1]} : vector<2x30xf32> to vector<2x10xf32>
    %78 = arith.mulf %75, %54 : vector<2x10xf32>
    %79 = arith.mulf %76, %74 : vector<2x10xf32>
    %80 = arith.addf %78, %79 : vector<2x10xf32>
    %81 = math.tanh %80 : vector<2x10xf32>
    %82 = arith.mulf %77, %81 : vector<2x10xf32>
    %c0_27 = arith.constant 0 : index
    %c2 = arith.constant 2 : index
    %c0_28 = arith.constant 0 : index
    %83 = vector.load %arg7[%c0_27, %c2, %c0_28] : memref<2x8x10xf32, #tpu.memory_space<vmem>>, vector<2x1x10xf32>
    %84 = vector.shape_cast %83 : vector<2x1x10xf32> to vector<2x10xf32>
    %85 = vector.shape_cast %82 : vector<2x10xf32> to vector<2x1x10xf32>
    tpu.vector_store %arg7[%c0_27, %c2, %c0_28], %85 {strides = array<i32>} : memref<2x8x10xf32, #tpu.memory_space<vmem>>, vector<2x1x10xf32>,
    %c0_29 = arith.constant 0 : index
    %c2_30 = arith.constant 2 : index
    %c0_31 = arith.constant 0 : index
    %86 = vector.load %arg8[%c0_29, %c2_30, %c0_31] : memref<2x8x10xf32, #tpu.memory_space<vmem>>, vector<2x1x10xf32>
    %87 = vector.shape_cast %86 : vector<2x1x10xf32> to vector<2x10xf32>
    %88 = vector.shape_cast %80 : vector<2x10xf32> to vector<2x1x10xf32>
    tpu.vector_store %arg8[%c0_29, %c2_30, %c0_31], %88 {strides = array<i32>} : memref<2x8x10xf32, #tpu.memory_space<vmem>>, vector<2x1x10xf32>,
    %89 = vector.extract_strided_slice %8 {offsets = [0, 3, 0], sizes = [2, 1, 40], strides = [1, 1, 1]} : vector<2x8x40xf32> to vector<2x1x40xf32>
    %90 = vector.shape_cast %89 : vector<2x1x40xf32> to vector<2x40xf32>
    %cst_32 = arith.constant dense<0.000000e+00> : vector<2x40xf32>
    %91 = tpu.matmul %82, %0, %cst_32 {dimension_numbers = #tpu.dot_dimension_numbers<[1], [0], [0], [1], [0, 0, 1, 1], [], []>} : vector<2x10xf32>, vector<10x40xf32>, vector<2x40xf32> -> vector<2x40xf32>
    %92 = arith.addf %90, %91 : vector<2x40xf32>
    %93 = vector.extract_strided_slice %92 {offsets = [0, 0], sizes = [2, 30], strides = [1, 1]} : vector<2x40xf32> to vector<2x30xf32>
    %94 = arith.negf %93 : vector<2x30xf32>
    %95 = math.exp %94 : vector<2x30xf32>
    %cst_33 = arith.constant 1.000000e+00 : f32
    %96 = vector.broadcast %cst_33 : f32 to vector<2x30xf32>
    %97 = arith.addf %96, %95 : vector<2x30xf32>
    %98 = arith.divf %96, %97 : vector<2x30xf32>
    %99 = vector.extract_strided_slice %92 {offsets = [0, 30], sizes = [2, 10], strides = [1, 1]} : vector<2x40xf32> to vector<2x10xf32>
    %100 = math.tanh %99 : vector<2x10xf32>
    %101 = vector.extract_strided_slice %98 {offsets = [0, 0], sizes = [2, 10], strides = [1, 1]} : vector<2x30xf32> to vector<2x10xf32>
    %102 = vector.extract_strided_slice %98 {offsets = [0, 10], sizes = [2, 10], strides = [1, 1]} : vector<2x30xf32> to vector<2x10xf32>
    %103 = vector.extract_strided_slice %98 {offsets = [0, 20], sizes = [2, 10], strides = [1, 1]} : vector<2x30xf32> to vector<2x10xf32>
    %104 = arith.mulf %101, %80 : vector<2x10xf32>
    %105 = arith.mulf %102, %100 : vector<2x10xf32>
    %106 = arith.addf %104, %105 : vector<2x10xf32>
    %107 = math.tanh %106 : vector<2x10xf32>
    %108 = arith.mulf %103, %107 : vector<2x10xf32>
    %c0_34 = arith.constant 0 : index
    %c3 = arith.constant 3 : index
    %c0_35 = arith.constant 0 : index
    %109 = vector.load %arg7[%c0_34, %c3, %c0_35] : memref<2x8x10xf32, #tpu.memory_space<vmem>>, vector<2x1x10xf32>
    %110 = vector.shape_cast %109 : vector<2x1x10xf32> to vector<2x10xf32>
    %111 = vector.shape_cast %108 : vector<2x10xf32> to vector<2x1x10xf32>
    tpu.vector_store %arg7[%c0_34, %c3, %c0_35], %111 {strides = array<i32>} : memref<2x8x10xf32, #tpu.memory_space<vmem>>, vector<2x1x10xf32>,
    %c0_36 = arith.constant 0 : index
    %c3_37 = arith.constant 3 : index
    %c0_38 = arith.constant 0 : index
    %112 = vector.load %arg8[%c0_36, %c3_37, %c0_38] : memref<2x8x10xf32, #tpu.memory_space<vmem>>, vector<2x1x10xf32>
    %113 = vector.shape_cast %112 : vector<2x1x10xf32> to vector<2x10xf32>
    %114 = vector.shape_cast %106 : vector<2x10xf32> to vector<2x1x10xf32>
    tpu.vector_store %arg8[%c0_36, %c3_37, %c0_38], %114 {strides = array<i32>} : memref<2x8x10xf32, #tpu.memory_space<vmem>>, vector<2x1x10xf32>,
    %115 = vector.extract_strided_slice %8 {offsets = [0, 4, 0], sizes = [2, 1, 40], strides = [1, 1, 1]} : vector<2x8x40xf32> to vector<2x1x40xf32>
    %116 = vector.shape_cast %115 : vector<2x1x40xf32> to vector<2x40xf32>
    %cst_39 = arith.constant dense<0.000000e+00> : vector<2x40xf32>
    %117 = tpu.matmul %108, %0, %cst_39 {dimension_numbers = #tpu.dot_dimension_numbers<[1], [0], [0], [1], [0, 0, 1, 1], [], []>} : vector<2x10xf32>, vector<10x40xf32>, vector<2x40xf32> -> vector<2x40xf32>
    %118 = arith.addf %116, %117 : vector<2x40xf32>
    %119 = vector.extract_strided_slice %118 {offsets = [0, 0], sizes = [2, 30], strides = [1, 1]} : vector<2x40xf32> to vector<2x30xf32>
    %120 = arith.negf %119 : vector<2x30xf32>
    %121 = math.exp %120 : vector<2x30xf32>
    %cst_40 = arith.constant 1.000000e+00 : f32
    %122 = vector.broadcast %cst_40 : f32 to vector<2x30xf32>
    %123 = arith.addf %122, %121 : vector<2x30xf32>
    %124 = arith.divf %122, %123 : vector<2x30xf32>
    %125 = vector.extract_strided_slice %118 {offsets = [0, 30], sizes = [2, 10], strides = [1, 1]} : vector<2x40xf32> to vector<2x10xf32>
    %126 = math.tanh %125 : vector<2x10xf32>
    %127 = vector.extract_strided_slice %124 {offsets = [0, 0], sizes = [2, 10], strides = [1, 1]} : vector<2x30xf32> to vector<2x10xf32>
    %128 = vector.extract_strided_slice %124 {offsets = [0, 10], sizes = [2, 10], strides = [1, 1]} : vector<2x30xf32> to vector<2x10xf32>
    %129 = vector.extract_strided_slice %124 {offsets = [0, 20], sizes = [2, 10], strides = [1, 1]} : vector<2x30xf32> to vector<2x10xf32>
    %130 = arith.mulf %127, %106 : vector<2x10xf32>
    %131 = arith.mulf %128, %126 : vector<2x10xf32>
    %132 = arith.addf %130, %131 : vector<2x10xf32>
    %133 = math.tanh %132 : vector<2x10xf32>
    %134 = arith.mulf %129, %133 : vector<2x10xf32>
    %c0_41 = arith.constant 0 : index
    %c4 = arith.constant 4 : index
    %c0_42 = arith.constant 0 : index
    %135 = vector.load %arg7[%c0_41, %c4, %c0_42] : memref<2x8x10xf32, #tpu.memory_space<vmem>>, vector<2x1x10xf32>
    %136 = vector.shape_cast %135 : vector<2x1x10xf32> to vector<2x10xf32>
    %137 = vector.shape_cast %134 : vector<2x10xf32> to vector<2x1x10xf32>
    tpu.vector_store %arg7[%c0_41, %c4, %c0_42], %137 {strides = array<i32>} : memref<2x8x10xf32, #tpu.memory_space<vmem>>, vector<2x1x10xf32>,
    %c0_43 = arith.constant 0 : index
    %c4_44 = arith.constant 4 : index
    %c0_45 = arith.constant 0 : index
    %138 = vector.load %arg8[%c0_43, %c4_44, %c0_45] : memref<2x8x10xf32, #tpu.memory_space<vmem>>, vector<2x1x10xf32>
    %139 = vector.shape_cast %138 : vector<2x1x10xf32> to vector<2x10xf32>
    %140 = vector.shape_cast %132 : vector<2x10xf32> to vector<2x1x10xf32>
    tpu.vector_store %arg8[%c0_43, %c4_44, %c0_45], %140 {strides = array<i32>} : memref<2x8x10xf32, #tpu.memory_space<vmem>>, vector<2x1x10xf32>,
    %141 = vector.extract_strided_slice %8 {offsets = [0, 5, 0], sizes = [2, 1, 40], strides = [1, 1, 1]} : vector<2x8x40xf32> to vector<2x1x40xf32>
    %142 = vector.shape_cast %141 : vector<2x1x40xf32> to vector<2x40xf32>
    %cst_46 = arith.constant dense<0.000000e+00> : vector<2x40xf32>
    %143 = tpu.matmul %134, %0, %cst_46 {dimension_numbers = #tpu.dot_dimension_numbers<[1], [0], [0], [1], [0, 0, 1, 1], [], []>} : vector<2x10xf32>, vector<10x40xf32>, vector<2x40xf32> -> vector<2x40xf32>
    %144 = arith.addf %142, %143 : vector<2x40xf32>
    %145 = vector.extract_strided_slice %144 {offsets = [0, 0], sizes = [2, 30], strides = [1, 1]} : vector<2x40xf32> to vector<2x30xf32>
    %146 = arith.negf %145 : vector<2x30xf32>
    %147 = math.exp %146 : vector<2x30xf32>
    %cst_47 = arith.constant 1.000000e+00 : f32
    %148 = vector.broadcast %cst_47 : f32 to vector<2x30xf32>
    %149 = arith.addf %148, %147 : vector<2x30xf32>
    %150 = arith.divf %148, %149 : vector<2x30xf32>
    %151 = vector.extract_strided_slice %144 {offsets = [0, 30], sizes = [2, 10], strides = [1, 1]} : vector<2x40xf32> to vector<2x10xf32>
    %152 = math.tanh %151 : vector<2x10xf32>
    %153 = vector.extract_strided_slice %150 {offsets = [0, 0], sizes = [2, 10], strides = [1, 1]} : vector<2x30xf32> to vector<2x10xf32>
    %154 = vector.extract_strided_slice %150 {offsets = [0, 10], sizes = [2, 10], strides = [1, 1]} : vector<2x30xf32> to vector<2x10xf32>
    %155 = vector.extract_strided_slice %150 {offsets = [0, 20], sizes = [2, 10], strides = [1, 1]} : vector<2x30xf32> to vector<2x10xf32>
    %156 = arith.mulf %153, %132 : vector<2x10xf32>
    %157 = arith.mulf %154, %152 : vector<2x10xf32>
    %158 = arith.addf %156, %157 : vector<2x10xf32>
    %159 = math.tanh %158 : vector<2x10xf32>
    %160 = arith.mulf %155, %159 : vector<2x10xf32>
    %c0_48 = arith.constant 0 : index
    %c5 = arith.constant 5 : index
    %c0_49 = arith.constant 0 : index
    %161 = vector.load %arg7[%c0_48, %c5, %c0_49] : memref<2x8x10xf32, #tpu.memory_space<vmem>>, vector<2x1x10xf32>
    %162 = vector.shape_cast %161 : vector<2x1x10xf32> to vector<2x10xf32>
    %163 = vector.shape_cast %160 : vector<2x10xf32> to vector<2x1x10xf32>
    tpu.vector_store %arg7[%c0_48, %c5, %c0_49], %163 {strides = array<i32>} : memref<2x8x10xf32, #tpu.memory_space<vmem>>, vector<2x1x10xf32>,
    %c0_50 = arith.constant 0 : index
    %c5_51 = arith.constant 5 : index
    %c0_52 = arith.constant 0 : index
    %164 = vector.load %arg8[%c0_50, %c5_51, %c0_52] : memref<2x8x10xf32, #tpu.memory_space<vmem>>, vector<2x1x10xf32>
    %165 = vector.shape_cast %164 : vector<2x1x10xf32> to vector<2x10xf32>
    %166 = vector.shape_cast %158 : vector<2x10xf32> to vector<2x1x10xf32>
    tpu.vector_store %arg8[%c0_50, %c5_51, %c0_52], %166 {strides = array<i32>} : memref<2x8x10xf32, #tpu.memory_space<vmem>>, vector<2x1x10xf32>,
    %167 = vector.extract_strided_slice %8 {offsets = [0, 6, 0], sizes = [2, 1, 40], strides = [1, 1, 1]} : vector<2x8x40xf32> to vector<2x1x40xf32>
    %168 = vector.shape_cast %167 : vector<2x1x40xf32> to vector<2x40xf32>
    %cst_53 = arith.constant dense<0.000000e+00> : vector<2x40xf32>
    %169 = tpu.matmul %160, %0, %cst_53 {dimension_numbers = #tpu.dot_dimension_numbers<[1], [0], [0], [1], [0, 0, 1, 1], [], []>} : vector<2x10xf32>, vector<10x40xf32>, vector<2x40xf32> -> vector<2x40xf32>
    %170 = arith.addf %168, %169 : vector<2x40xf32>
    %171 = vector.extract_strided_slice %170 {offsets = [0, 0], sizes = [2, 30], strides = [1, 1]} : vector<2x40xf32> to vector<2x30xf32>
    %172 = arith.negf %171 : vector<2x30xf32>
    %173 = math.exp %172 : vector<2x30xf32>
    %cst_54 = arith.constant 1.000000e+00 : f32
    %174 = vector.broadcast %cst_54 : f32 to vector<2x30xf32>
    %175 = arith.addf %174, %173 : vector<2x30xf32>
    %176 = arith.divf %174, %175 : vector<2x30xf32>
    %177 = vector.extract_strided_slice %170 {offsets = [0, 30], sizes = [2, 10], strides = [1, 1]} : vector<2x40xf32> to vector<2x10xf32>
    %178 = math.tanh %177 : vector<2x10xf32>
    %179 = vector.extract_strided_slice %176 {offsets = [0, 0], sizes = [2, 10], strides = [1, 1]} : vector<2x30xf32> to vector<2x10xf32>
    %180 = vector.extract_strided_slice %176 {offsets = [0, 10], sizes = [2, 10], strides = [1, 1]} : vector<2x30xf32> to vector<2x10xf32>
    %181 = vector.extract_strided_slice %176 {offsets = [0, 20], sizes = [2, 10], strides = [1, 1]} : vector<2x30xf32> to vector<2x10xf32>
    %182 = arith.mulf %179, %158 : vector<2x10xf32>
    %183 = arith.mulf %180, %178 : vector<2x10xf32>
    %184 = arith.addf %182, %183 : vector<2x10xf32>
    %185 = math.tanh %184 : vector<2x10xf32>
    %186 = arith.mulf %181, %185 : vector<2x10xf32>
    %c0_55 = arith.constant 0 : index
    %c6 = arith.constant 6 : index
    %c0_56 = arith.constant 0 : index
    %187 = vector.load %arg7[%c0_55, %c6, %c0_56] : memref<2x8x10xf32, #tpu.memory_space<vmem>>, vector<2x1x10xf32>
    %188 = vector.shape_cast %187 : vector<2x1x10xf32> to vector<2x10xf32>
    %189 = vector.shape_cast %186 : vector<2x10xf32> to vector<2x1x10xf32>
    tpu.vector_store %arg7[%c0_55, %c6, %c0_56], %189 {strides = array<i32>} : memref<2x8x10xf32, #tpu.memory_space<vmem>>, vector<2x1x10xf32>,
    %c0_57 = arith.constant 0 : index
    %c6_58 = arith.constant 6 : index
    %c0_59 = arith.constant 0 : index
    %190 = vector.load %arg8[%c0_57, %c6_58, %c0_59] : memref<2x8x10xf32, #tpu.memory_space<vmem>>, vector<2x1x10xf32>
    %191 = vector.shape_cast %190 : vector<2x1x10xf32> to vector<2x10xf32>
    %192 = vector.shape_cast %184 : vector<2x10xf32> to vector<2x1x10xf32>
    tpu.vector_store %arg8[%c0_57, %c6_58, %c0_59], %192 {strides = array<i32>} : memref<2x8x10xf32, #tpu.memory_space<vmem>>, vector<2x1x10xf32>,
    %193 = vector.extract_strided_slice %8 {offsets = [0, 7, 0], sizes = [2, 1, 40], strides = [1, 1, 1]} : vector<2x8x40xf32> to vector<2x1x40xf32>
    %194 = vector.shape_cast %193 : vector<2x1x40xf32> to vector<2x40xf32>
    %cst_60 = arith.constant dense<0.000000e+00> : vector<2x40xf32>
    %195 = tpu.matmul %186, %0, %cst_60 {dimension_numbers = #tpu.dot_dimension_numbers<[1], [0], [0], [1], [0, 0, 1, 1], [], []>} : vector<2x10xf32>, vector<10x40xf32>, vector<2x40xf32> -> vector<2x40xf32>
    %196 = arith.addf %194, %195 : vector<2x40xf32>
    %197 = vector.extract_strided_slice %196 {offsets = [0, 0], sizes = [2, 30], strides = [1, 1]} : vector<2x40xf32> to vector<2x30xf32>
    %198 = arith.negf %197 : vector<2x30xf32>
    %199 = math.exp %198 : vector<2x30xf32>
    %cst_61 = arith.constant 1.000000e+00 : f32
    %200 = vector.broadcast %cst_61 : f32 to vector<2x30xf32>
    %201 = arith.addf %200, %199 : vector<2x30xf32>
    %202 = arith.divf %200, %201 : vector<2x30xf32>
    %203 = vector.extract_strided_slice %196 {offsets = [0, 30], sizes = [2, 10], strides = [1, 1]} : vector<2x40xf32> to vector<2x10xf32>
    %204 = math.tanh %203 : vector<2x10xf32>
    %205 = vector.extract_strided_slice %202 {offsets = [0, 0], sizes = [2, 10], strides = [1, 1]} : vector<2x30xf32> to vector<2x10xf32>
    %206 = vector.extract_strided_slice %202 {offsets = [0, 10], sizes = [2, 10], strides = [1, 1]} : vector<2x30xf32> to vector<2x10xf32>
    %207 = vector.extract_strided_slice %202 {offsets = [0, 20], sizes = [2, 10], strides = [1, 1]} : vector<2x30xf32> to vector<2x10xf32>
    %208 = arith.mulf %205, %184 : vector<2x10xf32>
    %209 = arith.mulf %206, %204 : vector<2x10xf32>
    %210 = arith.addf %208, %209 : vector<2x10xf32>
    %211 = math.tanh %210 : vector<2x10xf32>
    %212 = arith.mulf %207, %211 : vector<2x10xf32>
    %c0_62 = arith.constant 0 : index
    %c7 = arith.constant 7 : index
    %c0_63 = arith.constant 0 : index
    %213 = vector.load %arg7[%c0_62, %c7, %c0_63] : memref<2x8x10xf32, #tpu.memory_space<vmem>>, vector<2x1x10xf32>
    %214 = vector.shape_cast %213 : vector<2x1x10xf32> to vector<2x10xf32>
    %215 = vector.shape_cast %212 : vector<2x10xf32> to vector<2x1x10xf32>
    tpu.vector_store %arg7[%c0_62, %c7, %c0_63], %215 {strides = array<i32>} : memref<2x8x10xf32, #tpu.memory_space<vmem>>, vector<2x1x10xf32>,
    %c0_64 = arith.constant 0 : index
    %c7_65 = arith.constant 7 : index
    %c0_66 = arith.constant 0 : index
    %216 = vector.load %arg8[%c0_64, %c7_65, %c0_66] : memref<2x8x10xf32, #tpu.memory_space<vmem>>, vector<2x1x10xf32>
    %217 = vector.shape_cast %216 : vector<2x1x10xf32> to vector<2x10xf32>
    %218 = vector.shape_cast %210 : vector<2x10xf32> to vector<2x1x10xf32>
    tpu.vector_store %arg8[%c0_64, %c7_65, %c0_66], %218 {strides = array<i32>} : memref<2x8x10xf32, #tpu.memory_space<vmem>>, vector<2x1x10xf32>,
    %c0_67 = arith.constant 0 : index
    %c0_68 = arith.constant 0 : index
    %219 = vector.load %arg4[%c0_67, %c0_68] : memref<1x10xf32, #tpu.memory_space<vmem>>, vector<1x10xf32>
    %220 = vector.broadcast %219 : vector<1x10xf32> to vector<2x10xf32>
    %221 = arith.mulf %212, %220 : vector<2x10xf32>
    %cst_69 = arith.constant dense<0.000000e+00> : vector<2xf32>
    %222 = vector.multi_reduction <add>, %221, %cst_69 [1] : vector<2x10xf32> to vector<2xf32>
    %223 = vector.shape_cast %222 : vector<2xf32> to vector<2x1xf32>
    %c0_70 = arith.constant 0 : index
    %c0_71 = arith.constant 0 : index
    %224 = vector.load %arg5[%c0_70, %c0_71] : memref<1x1xf32, #tpu.memory_space<vmem>>, vector<1x1xf32>
    %225 = vector.broadcast %224 : vector<1x1xf32> to vector<2x1xf32>
    %226 = arith.addf %223, %225 : vector<2x1xf32>
    %c0_72 = arith.constant 0 : index
    %c0_73 = arith.constant 0 : index
    %227 = vector.load %arg6[%c0_72, %c0_73] : memref<2x1xf32, #tpu.memory_space<vmem>>, vector<2x1xf32>
    tpu.vector_store %arg6[%c0_72, %c0_73], %226 {strides = array<i32>} : memref<2x1xf32, #tpu.memory_space<vmem>>, vector<2x1xf32>,
    return
  }
}

</mosaic_0001>

<bundles_post_ra>
// kernel: tpu_custom_call.1
= control target key start
LH: loop header
LB: loop body
LE: loop exit
PB: predicated region body
PF: predicated region fallthrough
CT: control target
= control target key end

     0   :  { %s2116_s0 = inlined_call_operand.vmem [shape: f32[2,8,5], index: 0, kind: input, shape index: {}]   ;;  %s2117_s1 = inlined_call_operand.vmem [shape: f32[5,40], index: 1, kind: input, shape index: {}]   ;;  %s2118_s2 = inlined_call_operand.vmem [shape: f32[10,40], index: 2, kind: input, shape index: {}]   ;;  %s2119_s3 = inlined_call_operand.vmem [shape: f32[1,40], index: 3, kind: input, shape index: {}]   ;;  %s2120_s4 = inlined_call_operand.vmem [shape: f32[1,10], index: 4, kind: input, shape index: {}]   ;;  %s2121_s5 = inlined_call_operand.<no memory space> [shape: f32[1,1], index: 5, kind: input, shape index: {}]   ;;  %s2122_s6 = inlined_call_operand.vmem [shape: f32[2,1], index: 6, kind: output, shape index: {0}]   ;;  %s2123_s7 = inlined_call_operand.hbm [shape: f32[2,8,10], index: 7, kind: output, shape index: {1}]   ;;  %s2124_s8 = inlined_call_operand.hbm [shape: f32[2,8,10], index: 8, kind: output, shape index: {2}]  }
   0x1   :  { %v14_v0 = vstv %s2121_s5 }
   0x2   :  { %15 = vst [vmem:[#allocation2] sm:$0x1] %v14_v0 }
   0x3   :  { %16 = vsyncpa [#allocation4], 0  ;;  %v34_v1 = vld [vmem:[%s2117_s1] sm:$0x1f]  ;;  %vm49_vm0 = vcmask 1044480   ;;  %vm42_vm1 = vcmask 39936  }
   0x4   :  { %v32_v2 = vld [vmem:[%s2116_s0] sm:$0xff]  ;;  %1467 = vmatprep.subr.msk.mxu0 %vm49_vm0, %v34_v1  ;;  %v33_v3 = vld [vmem:[%s2116_s0 + $0x8] sm:$0xff]  ;;  %vm132_vm2 = vcmask 1041408   ;;  %v1747_v6 = vmov 0.0|0.0   ;;  %vm1748_vm3 = vmmov 1   ;;  %vm1749_vm5 = vmmov 0  }
   0x5   :  { %1469 = vmatprep.mubr.msk.f32.mxu0 %vm42_vm1, %v32_v2  ;;  %v30_v4 = vld [vmem:[%s2118_s2] sm:$0xff]  ;;  %v31_v5 = vld [vmem:[%s2118_s2 + $0x8] sm:$0x3]  ;;  %1468 = vmatpush3.msk.msra.mxu0 %vm49_vm0, %v34_v1  ;;  %vm1824_vm4 = vmpackc.low %vm132_vm2, %vm1748_vm3  ;;  %v1750_v9 = vmov 0.0  }
   0x6   :  { %1528 = vmatprep.subr.bf16.mxu1 %v1747_v6  ;;  %v1822_v7 = vpack.c.bf16 %v31_v5, %v30_v4  ;;  %1470 = vmatmul.mubr.msk.f32.vlgmr.msra.gmra.mrb[0].mxu0 %vm42_vm1, %v33_v3 }
   0x7   :  { %1476 = vmatprep.mubr.msk.f32.mxu1 %vm1749_vm5, %v1750_v9 }
   0x8   :  { %17 = vsyncpa [#allocation6], 0  ;;  %1531 = vmatpush3.bf16.msk.msra.mxu1 %vm1824_vm4, %v1822_v7  ;;  %1532 = vmatprep.subr.bf16.mxu0 %v1747_v6  ;;  %v1403_v12 = vld [vmem:[%s2119_s3] ss:$0 sm:$0xff]  ;;  %s1751_s2 = smov 108   ;;  %s1752_s3 = smov 118  }
   0x9   :  { %1535 = vmatpush3.bf16.msk.msra.mxu0 %vm1824_vm4, %v1822_v7  ;;  %1483 = vmatprep.mubr.msk.f32.mxu0 %vm1749_vm5, %v1750_v9  ;;  %vm268_vm6 = vcmask 73728   ;;  %s1753_s16 = smov 20   ;;  %vm274_vm7 = vcmask 1041409   ;;  %vm128_vm8 = vcmask 80896   ;;  %vm418_vm9 = vcmask 74753  }
   0xa   :  { %1536 = vmatprep.subr.bf16.mxu1 %v1747_v6  ;;  %1540 = vmatprep.subr.bf16.mxu0 %v1747_v6  ;;  %vm568_vm10 = vcmask 75778   ;;  %vm719_vm11 = vcmask 76803   ;;  %vm870_vm12 = vcmask 77828   ;;  %vm1021_vm13 = vcmask 78853  }
   0xb   :  { %1477 = vmatmul.mubr.f32.vlgmr.msra.gmra.mrb[0].mxu1 %v1750_v9  ;;  %vm1172_vm14 = vcmask 79878   ;;  %vm1323_vm15 = vcmask 80903  }
   0xc   :  { %1539 = vmatpush3.bf16.msk.msra.mxu1 %vm1824_vm4, %v1822_v7  ;;  %1490 = vmatprep.mubr.msk.f32.mxu1 %vm1749_vm5, %v1750_v9 }
   0xd   :  { %1544 = vmatprep.subr.bf16.mxu1 %v1747_v6 }
  0xd9   :  { %v1471_v10 = vpop.f32.mrb[0].mxu0 }
  0xda   :  { %v119_v11 = vpop.f32.mrb[1].mxu0  ;;  %v1851_v13 = vadd.f32 %v1471_v10, %v1403_v12 }
  0xdb   :  { %v1853_v17 = vadd.f32 %v1403_v12, %v119_v11 }
  0xde   :  { %v202_v14 = vpop.f32.mrb[0].mxu1 }
  0xdf   :  { %v207_v15 = vrot.slane %v202_v14, 1  ;;  %v1478_v16 = vpop.f32.mrb[1].mxu1  ;;  %v210_v19 = vadd.f32 %v202_v14, %v1853_v17 }
  0xe1   :  { %v211_v18 = vadd.f32 %v207_v15, %v1851_v13  ;;  %v1408_v23 = vmul.f32 -1.442695, %v210_v19 }
  0xe3   :  { %1571 = vtanh.f32 %v211_v18  ;;  %v1409_v22 = vmul.f32 -1.442695, %v211_v18 }
  0xe4   :  { %1573 = vtanh.f32 %v210_v19 }
  0xe5   :  { %1575 = vpow2.f32 %v1409_v22 }
  0xe6   :  { %1577 = vpow2.f32 %v1408_v23 }
  0xed   :  { %v1572_v20 = vpop.eup %1571 }
  0xee   :  { %232 = vrot.lane.b32.xlu0 %v1572_v20, %s1751_s2  ;;  %v1574_v21 = vpop.eup %1573 }
  0xef   :  { %v1576_v24 = vpop.eup %1575 }
  0xf0   :  { %v219_v25 = vadd.f32 1.0, %v1576_v24  ;;  %v1578_v26 = vpop.eup %1577 }
  0xf1   :  { %v218_v27 = vadd.f32 1.0, %v1578_v26 }
  0xf2   :  { %230 = vrot.lane.b32.xlu0 %v1574_v21, %s1751_s2  ;;  %1579 = vrcp.f32 %v219_v25 }
  0xf3   :  { %1581 = vrcp.f32 %v218_v27 }
  0xfc   :  { %v1580_v28 = vpop.eup %1579 }
  0xfd   :  { %v1582_v31 = vpop.eup %1581  ;;  %v227_v34 = vmul.f32 0.0, %v1580_v28 }
  0xfe   :  { %v226_v37 = vmul.f32 0.0, %v1582_v31 }
 0x160   :  { %v233_v29 = vpop.permute.xlu0 %232 }
 0x161   :  { %v237_v30 = vmul.f32 %v1580_v28, %v233_v29 }
 0x163   :  { %242 = vrot.lane.b32.xlu1 %v237_v30, %s1752_s3 }
 0x164   :  { %v231_v32 = vpop.permute.xlu0 %230 }
 0x165   :  { %v236_v33 = vmul.f32 %v1582_v31, %v231_v32 }
 0x167   :  { %240 = vrot.lane.b32.xlu1 %v236_v33, %s1752_s3 }
 0x1d5   :  { %v243_v35 = vpop.permute.xlu1 %242 }
 0x1d6   :  { %v247_v36 = vadd.f32 %v243_v35, %v227_v34 }
 0x1d8   :  { %1583 = vtanh.f32 %v247_v36  ;;  %272 = vst.msk [vmem:[#allocation5 + $0x8] sm:$0x1] %vm268_vm6, %v247_v36  ;;  %v373_v4 = vrot.slane %v247_v36, 7 }
 0x1d9   :  { %v241_v38 = vpop.permute.xlu1 %240 }
 0x1da   :  { %v246_v39 = vadd.f32 %v241_v38, %v226_v37 }
 0x1dc   :  { %1585 = vtanh.f32 %v246_v39  ;;  %271 = vst.msk [vmem:[#allocation5] sm:$0x1] %vm268_vm6, %v246_v39  ;;  %v372_v11 = vrot.slane %v246_v39, 7 }
 0x1e2   :  { %v1584_v40 = vpop.eup %1583 }
 0x1e3   :  { %254 = vrot.lane.b32.xlu0 %v1584_v40, %s1753_s16 }
 0x1e6   :  { %v1586_v41 = vpop.eup %1585 }
 0x1e7   :  { %252 = vrot.lane.b32.xlu1 %v1586_v41, %s1753_s16 }
 0x255   :  { %v255_v42 = vpop.permute.xlu0 %254 }
 0x256   :  { %v1865_v43 = vmul.f32 %v1580_v28, %v255_v42 }
 0x258   :  { %v273_v45 = vrot.slane %v1865_v43, 7 }
 0x259   :  { %v253_v44 = vpop.permute.xlu1 %252 }
 0x25a   :  { %v1868_v46 = vmul.f32 %v1582_v31, %v253_v44 }
 0x25c   :  { %v275_v47 = vsel %vm274_vm7, %v273_v45, %v1868_v46 }
 0x25d   :  { %276 = vrot.lane.b32.xlu0 %v275_v47, %s1751_s2 }
 0x2cf   :  { %v277_v48 = vpop.permute.xlu0 %276 }
 0x2d0   :  { %1484 = vmatmul.mubr.msk.f32.vlgmr.msra.gmra.mrb[2].mxu0 %vm128_vm8, %v277_v48 }
 0x2d1   :  { %1543 = vmatpush3.bf16.msk.msra.mxu0 %vm1824_vm4, %v1822_v7  ;;  %1497 = vmatprep.mubr.msk.f32.mxu0 %vm1749_vm5, %v1750_v9 }
 0x2d2   :  { %1548 = vmatprep.subr.bf16.mxu0 %v1747_v6 }
 0x3a3   :  { %v346_v49 = vpop.f32.mrb[2].mxu0 }
 0x3a4   :  { %v351_v50 = vrot.slane %v346_v49, 7  ;;  %v355_v51 = vadd.f32 %v346_v49, %v1851_v13  ;;  %v1485_v52 = vpop.f32.mrb[3].mxu0 }
 0x3a6   :  { %v354_v53 = vadd.f32 %v351_v50, %v1853_v17  ;;  %1587 = vtanh.f32 %v355_v51  ;;  %v1413_v56 = vmul.f32 -1.442695, %v355_v51 }
 0x3a8   :  { %1589 = vtanh.f32 %v354_v53  ;;  %v1412_v57 = vmul.f32 -1.442695, %v354_v53 }
 0x3a9   :  { %1591 = vpow2.f32 %v1413_v56 }
 0x3aa   :  { %1593 = vpow2.f32 %v1412_v57 }
 0x3b0   :  { %v1588_v54 = vpop.eup %1587 }
 0x3b1   :  { %382 = vrot.lane.b32.xlu0 %v1588_v54, %s1751_s2 }
 0x3b2   :  { %v1590_v55 = vpop.eup %1589 }
 0x3b3   :  { %380 = vrot.lane.b32.xlu1 %v1590_v55, %s1751_s2  ;;  %v1592_v58 = vpop.eup %1591 }
 0x3b4   :  { %v1594_v59 = vpop.eup %1593  ;;  %v363_v60 = vadd.f32 1.0, %v1592_v58 }
 0x3b5   :  { %v362_v61 = vadd.f32 1.0, %v1594_v59 }
 0x3b6   :  { %1595 = vrcp.f32 %v363_v60 }
 0x3b7   :  { %1597 = vrcp.f32 %v362_v61 }
 0x3c0   :  { %v1596_v62 = vpop.eup %1595 }
 0x3c1   :  { %v1598_v1 = vpop.eup %1597  ;;  %v377_v5 = vmul.f32 %v1596_v62, %v373_v4 }
 0x3c2   :  { %v376_v14 = vmul.f32 %v1598_v1, %v372_v11 }
 0x423   :  { %v383_v63 = vpop.permute.xlu0 %382 }
 0x424   :  { %v387_v0 = vmul.f32 %v1596_v62, %v383_v63 }
 0x425   :  { %v381_v2 = vpop.permute.xlu1 %380 }
 0x426   :  { %392 = vrot.lane.b32.xlu0 %v387_v0, %s1752_s3  ;;  %v386_v3 = vmul.f32 %v1598_v1, %v381_v2 }
 0x428   :  { %390 = vrot.lane.b32.xlu1 %v386_v3, %s1752_s3 }
 0x498   :  { %v393_v10 = vpop.permute.xlu0 %392 }
 0x499   :  { %v397_v12 = vadd.f32 %v393_v10, %v377_v5 }
 0x49a   :  { %v391_v15 = vpop.permute.xlu1 %390 }
 0x49b   :  { %1599 = vtanh.f32 %v397_v12  ;;  %422 = vst.msk [vmem:[#allocation5 + $0x8] sm:$0x2] %vm418_vm9, %v397_v12  ;;  %v396_v16 = vadd.f32 %v391_v15, %v376_v14  ;;  %v523_v50 = vrot.slane %v397_v12, 7 }
 0x49d   :  { %1601 = vtanh.f32 %v396_v16  ;;  %421 = vst.msk [vmem:[#allocation5] sm:$0x2] %vm418_vm9, %v396_v16  ;;  %v522_v49 = vrot.slane %v396_v16, 7 }
 0x4a5   :  { %v1600_v18 = vpop.eup %1599 }
 0x4a6   :  { %404 = vrot.lane.b32.xlu0 %v1600_v18, %s1753_s16 }
 0x4a7   :  { %v1602_v19 = vpop.eup %1601 }
 0x4a8   :  { %402 = vrot.lane.b32.xlu1 %v1602_v19, %s1753_s16 }
 0x518   :  { %v405_v20 = vpop.permute.xlu0 %404 }
 0x519   :  { %v1892_v23 = vmul.f32 %v1596_v62, %v405_v20 }
 0x51a   :  { %v403_v21 = vpop.permute.xlu1 %402 }
 0x51b   :  { %v1890_v22 = vmul.f32 %v1598_v1, %v403_v21 }
 0x51d   :  { %v423_v24 = vrot.slane %v1890_v22, 1 }
 0x51f   :  { %v424_v25 = vsel %vm274_vm7, %v1892_v23, %v423_v24 }
 0x520   :  { %425 = vrot.lane.b32.xlu1 %v424_v25, %s1751_s2 }
 0x592   :  { %v426_v26 = vpop.permute.xlu1 %425 }
 0x593   :  { %1491 = vmatmul.mubr.msk.f32.vlgmr.msra.gmra.mrb[2].mxu1 %vm128_vm8, %v426_v26 }
 0x594   :  { %1547 = vmatpush3.bf16.msk.msra.mxu1 %vm1824_vm4, %v1822_v7  ;;  %1504 = vmatprep.mubr.msk.f32.mxu1 %vm1749_vm5, %v1750_v9 }
 0x595   :  { %1552 = vmatprep.subr.bf16.mxu1 %v1747_v6 }
 0x666   :  { %v495_v27 = vpop.f32.mrb[2].mxu1 }
 0x667   :  { %v500_v28 = vrot.slane %v495_v27, 6  ;;  %v501_v29 = vrot.slane %v495_v27, 7  ;;  %v1492_v30 = vpop.f32.mrb[3].mxu1 }
 0x669   :  { %v504_v31 = vadd.f32 %v500_v28, %v1853_v17  ;;  %v505_v32 = vadd.f32 %v501_v29, %v1851_v13 }
 0x66b   :  { %1603 = vtanh.f32 %v504_v31  ;;  %v1416_v35 = vmul.f32 -1.442695, %v504_v31  ;;  %v1417_v36 = vmul.f32 -1.442695, %v505_v32 }
 0x66c   :  { %1605 = vtanh.f32 %v505_v32 }
 0x66d   :  { %1607 = vpow2.f32 %v1416_v35 }
 0x66e   :  { %1609 = vpow2.f32 %v1417_v36 }
 0x675   :  { %v1604_v33 = vpop.eup %1603 }
 0x676   :  { %v1606_v34 = vpop.eup %1605  ;;  %530 = vrot.lane.b32.xlu0 %v1604_v33, %s1751_s2 }
 0x677   :  { %532 = vrot.lane.b32.xlu1 %v1606_v34, %s1751_s2  ;;  %v1608_v37 = vpop.eup %1607 }
 0x678   :  { %v1610_v38 = vpop.eup %1609  ;;  %v512_v39 = vadd.f32 1.0, %v1608_v37 }
 0x679   :  { %v513_v40 = vadd.f32 1.0, %v1610_v38 }
 0x67a   :  { %1611 = vrcp.f32 %v512_v39 }
 0x67b   :  { %1613 = vrcp.f32 %v513_v40 }
 0x684   :  { %v1612_v41 = vpop.eup %1611 }
 0x685   :  { %v1614_v44 = vpop.eup %1613  ;;  %v526_v51 = vmul.f32 %v1612_v41, %v522_v49 }
 0x686   :  { %v527_v52 = vmul.f32 %v1614_v44, %v523_v50 }
 0x6e8   :  { %v531_v42 = vpop.permute.xlu0 %530 }
 0x6e9   :  { %v533_v45 = vpop.permute.xlu1 %532  ;;  %v536_v47 = vmul.f32 %v1612_v41, %v531_v42 }
 0x6ea   :  { %v537_v48 = vmul.f32 %v1614_v44, %v533_v45 }
 0x6eb   :  { %540 = vrot.lane.b32.xlu0 %v536_v47, %s1752_s3 }
 0x6ec   :  { %542 = vrot.lane.b32.xlu1 %v537_v48, %s1752_s3 }
 0x75d   :  { %v541_v53 = vpop.permute.xlu0 %540 }
 0x75e   :  { %v543_v54 = vpop.permute.xlu1 %542  ;;  %v546_v55 = vadd.f32 %v541_v53, %v526_v51 }
 0x75f   :  { %v547_v56 = vadd.f32 %v543_v54, %v527_v52 }
 0x760   :  { %1615 = vtanh.f32 %v546_v55  ;;  %571 = vst.msk [vmem:[#allocation5] sm:$0x4] %vm568_vm10, %v546_v55  ;;  %v673_v30 = vrot.slane %v546_v55, 7 }
 0x761   :  { %1617 = vtanh.f32 %v547_v56  ;;  %572 = vst.msk [vmem:[#allocation5 + $0x8] sm:$0x4] %vm568_vm10, %v547_v56  ;;  %v674_v31 = vrot.slane %v547_v56, 7 }
 0x76a   :  { %v1616_v57 = vpop.eup %1615 }
 0x76b   :  { %v1618_v58 = vpop.eup %1617  ;;  %552 = vrot.lane.b32.xlu0 %v1616_v57, %s1753_s16 }
 0x76c   :  { %554 = vrot.lane.b32.xlu1 %v1618_v58, %s1753_s16 }
 0x7dd   :  { %v553_v59 = vpop.permute.xlu0 %552 }
 0x7de   :  { %v555_v60 = vpop.permute.xlu1 %554  ;;  %v1915_v61 = vmul.f32 %v1612_v41, %v553_v59 }
 0x7df   :  { %v1917_v62 = vmul.f32 %v1614_v44, %v555_v60 }
 0x7e0   :  { %v573_v63 = vrot.slane %v1915_v61, 2 }
 0x7e1   :  { %v574_v0 = vrot.slane %v1917_v62, 1 }
 0x7e3   :  { %v575_v1 = vsel %vm274_vm7, %v574_v0, %v573_v63 }
 0x7e4   :  { %576 = vrot.lane.b32.xlu0 %v575_v1, %s1751_s2 }
 0x856   :  { %v577_v2 = vpop.permute.xlu0 %576 }
 0x857   :  { %1498 = vmatmul.mubr.msk.f32.vlgmr.msra.gmra.mrb[4].mxu0 %vm128_vm8, %v577_v2 }
 0x858   :  { %1551 = vmatpush3.bf16.msk.msra.mxu0 %vm1824_vm4, %v1822_v7  ;;  %1511 = vmatprep.mubr.msk.f32.mxu0 %vm1749_vm5, %v1750_v9 }
 0x859   :  { %1556 = vmatprep.subr.bf16.mxu0 %v1747_v6 }
 0x92a   :  { %v646_v3 = vpop.f32.mrb[4].mxu0 }
 0x92b   :  { %v651_v4 = vrot.slane %v646_v3, 5  ;;  %v652_v5 = vrot.slane %v646_v3, 6  ;;  %v1499_v10 = vpop.f32.mrb[5].mxu0 }
 0x92d   :  { %v655_v11 = vadd.f32 %v651_v4, %v1853_v17  ;;  %v656_v12 = vadd.f32 %v652_v5, %v1851_v13 }
 0x92f   :  { %1619 = vtanh.f32 %v655_v11  ;;  %v1420_v16 = vmul.f32 -1.442695, %v655_v11  ;;  %v1421_v18 = vmul.f32 -1.442695, %v656_v12 }
 0x930   :  { %1621 = vtanh.f32 %v656_v12 }
 0x931   :  { %1623 = vpow2.f32 %v1420_v16 }
 0x932   :  { %1625 = vpow2.f32 %v1421_v18 }
 0x939   :  { %v1620_v14 = vpop.eup %1619 }
 0x93a   :  { %v1622_v15 = vpop.eup %1621  ;;  %681 = vrot.lane.b32.xlu1 %v1620_v14, %s1751_s2 }
 0x93b   :  { %683 = vrot.lane.b32.xlu0 %v1622_v15, %s1751_s2  ;;  %v1624_v6 = vpop.eup %1623 }
 0x93c   :  { %v1626_v19 = vpop.eup %1625  ;;  %v663_v20 = vadd.f32 1.0, %v1624_v6 }
 0x93d   :  { %v664_v21 = vadd.f32 1.0, %v1626_v19 }
 0x93e   :  { %1627 = vrcp.f32 %v663_v20 }
 0x93f   :  { %1629 = vrcp.f32 %v664_v21 }
 0x948   :  { %v1628_v24 = vpop.eup %1627 }
 0x949   :  { %v1630_v26 = vpop.eup %1629  ;;  %v677_v32 = vmul.f32 %v1628_v24, %v673_v30 }
 0x94a   :  { %v678_v33 = vmul.f32 %v1630_v26, %v674_v31 }
 0x9ac   :  { %v682_v25 = vpop.permute.xlu1 %681 }
 0x9ad   :  { %v684_v27 = vpop.permute.xlu0 %683  ;;  %v687_v28 = vmul.f32 %v1628_v24, %v682_v25 }
 0x9ae   :  { %v688_v29 = vmul.f32 %v1630_v26, %v684_v27 }
 0x9af   :  { %691 = vrot.lane.b32.xlu1 %v687_v28, %s1752_s3 }
 0x9b0   :  { %693 = vrot.lane.b32.xlu0 %v688_v29, %s1752_s3 }
 0xa21   :  { %v692_v34 = vpop.permute.xlu1 %691 }
 0xa22   :  { %v694_v35 = vpop.permute.xlu0 %693  ;;  %v697_v36 = vadd.f32 %v692_v34, %v677_v32 }
 0xa23   :  { %v698_v37 = vadd.f32 %v694_v35, %v678_v33 }
 0xa24   :  { %1631 = vtanh.f32 %v697_v36  ;;  %722 = vst.msk [vmem:[#allocation5] sm:$0x8] %vm719_vm11, %v697_v36  ;;  %v824_v12 = vrot.slane %v697_v36, 7 }
 0xa25   :  { %1633 = vtanh.f32 %v698_v37  ;;  %723 = vst.msk [vmem:[#allocation5 + $0x8] sm:$0x8] %vm719_vm11, %v698_v37  ;;  %v825_v14 = vrot.slane %v698_v37, 7 }
 0xa2e   :  { %v1632_v38 = vpop.eup %1631 }
 0xa2f   :  { %v1634_v39 = vpop.eup %1633  ;;  %703 = vrot.lane.b32.xlu1 %v1632_v38, %s1753_s16 }
 0xa30   :  { %705 = vrot.lane.b32.xlu0 %v1634_v39, %s1753_s16 }
 0xaa1   :  { %v704_v40 = vpop.permute.xlu1 %703 }
 0xaa2   :  { %v706_v41 = vpop.permute.xlu0 %705  ;;  %v1940_v42 = vmul.f32 %v1628_v24, %v704_v40 }
 0xaa3   :  { %v1942_v44 = vmul.f32 %v1630_v26, %v706_v41 }
 0xaa4   :  { %v724_v45 = vrot.slane %v1940_v42, 3 }
 0xaa5   :  { %v725_v47 = vrot.slane %v1942_v44, 2 }
 0xaa7   :  { %v726_v48 = vsel %vm274_vm7, %v725_v47, %v724_v45 }
 0xaa8   :  { %727 = vrot.lane.b32.xlu1 %v726_v48, %s1751_s2 }
 0xb1a   :  { %v728_v49 = vpop.permute.xlu1 %727 }
 0xb1b   :  { %1505 = vmatmul.mubr.msk.f32.vlgmr.msra.gmra.mrb[4].mxu1 %vm128_vm8, %v728_v49 }
 0xb1c   :  { %1555 = vmatpush3.bf16.msk.msra.mxu1 %vm1824_vm4, %v1822_v7  ;;  %1518 = vmatprep.mubr.msk.f32.mxu1 %vm1749_vm5, %v1750_v9 }
 0xbee   :  { %v797_v50 = vpop.f32.mrb[4].mxu1 }
 0xbef   :  { %v802_v51 = vrot.slane %v797_v50, 4  ;;  %v803_v52 = vrot.slane %v797_v50, 5  ;;  %v1506_v53 = vpop.f32.mrb[5].mxu1 }
 0xbf1   :  { %v806_v54 = vadd.f32 %v802_v51, %v1853_v17  ;;  %v807_v55 = vadd.f32 %v803_v52, %v1851_v13 }
 0xbf3   :  { %1635 = vtanh.f32 %v806_v54  ;;  %v1424_v58 = vmul.f32 -1.442695, %v806_v54  ;;  %v1425_v59 = vmul.f32 -1.442695, %v807_v55 }
 0xbf4   :  { %1637 = vtanh.f32 %v807_v55 }
 0xbf5   :  { %1639 = vpow2.f32 %v1424_v58 }
 0xbf6   :  { %1641 = vpow2.f32 %v1425_v59 }
 0xbfd   :  { %v1636_v56 = vpop.eup %1635 }
 0xbfe   :  { %v1638_v57 = vpop.eup %1637  ;;  %832 = vrot.lane.b32.xlu0 %v1636_v56, %s1751_s2 }
 0xbff   :  { %834 = vrot.lane.b32.xlu1 %v1638_v57, %s1751_s2  ;;  %v1640_v60 = vpop.eup %1639 }
 0xc00   :  { %v1642_v63 = vpop.eup %1641  ;;  %v814_v0 = vadd.f32 1.0, %v1640_v60 }
 0xc01   :  { %v815_v1 = vadd.f32 1.0, %v1642_v63 }
 0xc02   :  { %1643 = vrcp.f32 %v814_v0 }
 0xc03   :  { %1645 = vrcp.f32 %v815_v1 }
 0xc0c   :  { %v1644_v2 = vpop.eup %1643 }
 0xc0d   :  { %v1646_v4 = vpop.eup %1645  ;;  %v828_v15 = vmul.f32 %v1644_v2, %v824_v12 }
 0xc0e   :  { %v829_v16 = vmul.f32 %v1646_v4, %v825_v14 }
 0xc70   :  { %v833_v3 = vpop.permute.xlu0 %832 }
 0xc71   :  { %v835_v5 = vpop.permute.xlu1 %834  ;;  %v838_v10 = vmul.f32 %v1644_v2, %v833_v3 }
 0xc72   :  { %v839_v11 = vmul.f32 %v1646_v4, %v835_v5 }
 0xc73   :  { %842 = vrot.lane.b32.xlu0 %v838_v10, %s1752_s3 }
 0xc74   :  { %844 = vrot.lane.b32.xlu1 %v839_v11, %s1752_s3 }
 0xce5   :  { %v843_v18 = vpop.permute.xlu0 %842 }
 0xce6   :  { %v845_v6 = vpop.permute.xlu1 %844  ;;  %v848_v19 = vadd.f32 %v843_v18, %v828_v15 }
 0xce7   :  { %v849_v20 = vadd.f32 %v845_v6, %v829_v16 }
 0xce8   :  { %1647 = vtanh.f32 %v848_v19  ;;  %873 = vst.msk [vmem:[#allocation5] sm:$0x10] %vm870_vm12, %v848_v19  ;;  %v975_v54 = vrot.slane %v848_v19, 7 }
 0xce9   :  { %1649 = vtanh.f32 %v849_v20  ;;  %874 = vst.msk [vmem:[#allocation5 + $0x8] sm:$0x10] %vm870_vm12, %v849_v20  ;;  %v976_v55 = vrot.slane %v849_v20, 7 }
 0xcf2   :  { %v1648_v21 = vpop.eup %1647 }
 0xcf3   :  { %v1650_v24 = vpop.eup %1649  ;;  %854 = vrot.lane.b32.xlu0 %v1648_v21, %s1753_s16 }
 0xcf4   :  { %856 = vrot.lane.b32.xlu1 %v1650_v24, %s1753_s16 }
 0xd65   :  { %v855_v25 = vpop.permute.xlu0 %854 }
 0xd66   :  { %v857_v26 = vpop.permute.xlu1 %856  ;;  %v1964_v27 = vmul.f32 %v1644_v2, %v855_v25 }
 0xd67   :  { %v1966_v28 = vmul.f32 %v1646_v4, %v857_v26 }
 0xd68   :  { %v875_v29 = vrot.slane %v1964_v27, 4 }
 0xd69   :  { %v876_v30 = vrot.slane %v1966_v28, 3 }
 0xd6b   :  { %v877_v31 = vsel %vm274_vm7, %v876_v30, %v875_v29 }
 0xd6c   :  { %878 = vrot.lane.b32.xlu0 %v877_v31, %s1751_s2 }
 0xdde   :  { %v879_v32 = vpop.permute.xlu0 %878 }
 0xddf   :  { %1512 = vmatmul.mubr.msk.f32.vlgmr.msra.gmra.mrb[6].mxu0 %vm128_vm8, %v879_v32 }
 0xde0   :  { %1559 = vmatpush3.bf16.msk.msra.mxu0 %vm1824_vm4, %v1822_v7  ;;  %1525 = vmatprep.mubr.msk.f32.mxu0 %vm1749_vm5, %v1750_v9 }
 0xeb2   :  { %v948_v33 = vpop.f32.mrb[6].mxu0 }
 0xeb3   :  { %v953_v34 = vrot.slane %v948_v33, 3  ;;  %v954_v35 = vrot.slane %v948_v33, 4  ;;  %v1513_v36 = vpop.f32.mrb[7].mxu0 }
 0xeb5   :  { %v957_v37 = vadd.f32 %v953_v34, %v1853_v17  ;;  %v958_v38 = vadd.f32 %v954_v35, %v1851_v13 }
 0xeb7   :  { %1651 = vtanh.f32 %v957_v37  ;;  %v1428_v7 = vmul.f32 -1.442695, %v957_v37  ;;  %v1429_v8 = vmul.f32 -1.442695, %v958_v38 }
 0xeb8   :  { %1653 = vtanh.f32 %v958_v38 }
 0xeb9   :  { %1655 = vpow2.f32 %v1428_v7 }
 0xeba   :  { %1657 = vpow2.f32 %v1429_v8 }
 0xec1   :  { %v1652_v39 = vpop.eup %1651 }
 0xec2   :  { %v1654_v40 = vpop.eup %1653  ;;  %983 = vrot.lane.b32.xlu1 %v1652_v39, %s1751_s2 }
 0xec3   :  { %985 = vrot.lane.b32.xlu0 %v1654_v40, %s1751_s2  ;;  %v1656_v9 = vpop.eup %1655 }
 0xec4   :  { %v1658_v41 = vpop.eup %1657  ;;  %v965_v45 = vadd.f32 1.0, %v1656_v9 }
 0xec5   :  { %v966_v47 = vadd.f32 1.0, %v1658_v41 }
 0xec6   :  { %1659 = vrcp.f32 %v965_v45 }
 0xec7   :  { %1661 = vrcp.f32 %v966_v47 }
 0xed0   :  { %v1660_v48 = vpop.eup %1659 }
 0xed1   :  { %v1662_v50 = vpop.eup %1661  ;;  %v979_v56 = vmul.f32 %v1660_v48, %v975_v54 }
 0xed2   :  { %v980_v57 = vmul.f32 %v1662_v50, %v976_v55 }
 0xf34   :  { %v984_v49 = vpop.permute.xlu1 %983 }
 0xf35   :  { %v986_v51 = vpop.permute.xlu0 %985  ;;  %v989_v52 = vmul.f32 %v1660_v48, %v984_v49 }
 0xf36   :  { %v990_v53 = vmul.f32 %v1662_v50, %v986_v51 }
 0xf37   :  { %993 = vrot.lane.b32.xlu1 %v989_v52, %s1752_s3 }
 0xf38   :  { %995 = vrot.lane.b32.xlu0 %v990_v53, %s1752_s3 }
 0xfa9   :  { %v994_v58 = vpop.permute.xlu1 %993 }
 0xfaa   :  { %v996_v59 = vpop.permute.xlu0 %995  ;;  %v999_v60 = vadd.f32 %v994_v58, %v979_v56 }
 0xfab   :  { %v1000_v63 = vadd.f32 %v996_v59, %v980_v57 }
 0xfac   :  { %1663 = vtanh.f32 %v999_v60  ;;  %1024 = vst.msk [vmem:[#allocation5] sm:$0x20] %vm1021_vm13, %v999_v60  ;;  %v1126_v39 = vrot.slane %v999_v60, 7 }
 0xfad   :  { %1665 = vtanh.f32 %v1000_v63  ;;  %1025 = vst.msk [vmem:[#allocation5 + $0x8] sm:$0x20] %vm1021_vm13, %v1000_v63  ;;  %v1127_v40 = vrot.slane %v1000_v63, 7 }
 0xfb6   :  { %v1664_v0 = vpop.eup %1663 }
 0xfb7   :  { %v1666_v1 = vpop.eup %1665  ;;  %1005 = vrot.lane.b32.xlu1 %v1664_v0, %s1753_s16 }
 0xfb8   :  { %1007 = vrot.lane.b32.xlu0 %v1666_v1, %s1753_s16 }
0x1029   :  { %v1006_v2 = vpop.permute.xlu1 %1005 }
0x102a   :  { %v1008_v3 = vpop.permute.xlu0 %1007  ;;  %v1988_v4 = vmul.f32 %v1660_v48, %v1006_v2 }
0x102b   :  { %v1990_v5 = vmul.f32 %v1662_v50, %v1008_v3 }
0x102c   :  { %v1026_v10 = vrot.slane %v1988_v4, 5 }
0x102d   :  { %v1027_v11 = vrot.slane %v1990_v5, 4 }
0x102f   :  { %v1028_v12 = vsel %vm274_vm7, %v1027_v11, %v1026_v10 }
0x1030   :  { %1029 = vrot.lane.b32.xlu1 %v1028_v12, %s1751_s2 }
0x10a2   :  { %v1030_v14 = vpop.permute.xlu1 %1029 }
0x10a3   :  { %1519 = vmatmul.mubr.msk.f32.vlgmr.msra.gmra.mrb[6].mxu1 %vm128_vm8, %v1030_v14 }
0x1176   :  { %v1099_v15 = vpop.f32.mrb[6].mxu1 }
0x1177   :  { %v1104_v16 = vrot.slane %v1099_v15, 2  ;;  %v1105_v18 = vrot.slane %v1099_v15, 3  ;;  %v1520_v6 = vpop.f32.mrb[7].mxu1 }
0x1179   :  { %v1108_v19 = vadd.f32 %v1104_v16, %v1853_v17  ;;  %v1109_v20 = vadd.f32 %v1105_v18, %v1851_v13 }
0x117b   :  { %1667 = vtanh.f32 %v1108_v19  ;;  %v1432_v25 = vmul.f32 -1.442695, %v1108_v19  ;;  %v1433_v26 = vmul.f32 -1.442695, %v1109_v20 }
0x117c   :  { %1669 = vtanh.f32 %v1109_v20 }
0x117d   :  { %1671 = vpow2.f32 %v1432_v25 }
0x117e   :  { %1673 = vpow2.f32 %v1433_v26 }
0x1185   :  { %v1668_v21 = vpop.eup %1667 }
0x1186   :  { %v1670_v24 = vpop.eup %1669  ;;  %1134 = vrot.lane.b32.xlu0 %v1668_v21, %s1751_s2 }
0x1187   :  { %1136 = vrot.lane.b32.xlu1 %v1670_v24, %s1751_s2  ;;  %v1672_v29 = vpop.eup %1671 }
0x1188   :  { %v1674_v30 = vpop.eup %1673  ;;  %v1116_v31 = vadd.f32 1.0, %v1672_v29 }
0x1189   :  { %v1117_v32 = vadd.f32 1.0, %v1674_v30 }
0x118a   :  { %1675 = vrcp.f32 %v1116_v31 }
0x118b   :  { %1677 = vrcp.f32 %v1117_v32 }
0x1194   :  { %v1676_v33 = vpop.eup %1675 }
0x1195   :  { %v1678_v35 = vpop.eup %1677  ;;  %v1130_v7 = vmul.f32 %v1676_v33, %v1126_v39 }
0x1196   :  { %v1131_v8 = vmul.f32 %v1678_v35, %v1127_v40 }
0x11f8   :  { %v1135_v34 = vpop.permute.xlu0 %1134 }
0x11f9   :  { %v1137_v36 = vpop.permute.xlu1 %1136  ;;  %v1140_v37 = vmul.f32 %v1676_v33, %v1135_v34 }
0x11fa   :  { %v1141_v38 = vmul.f32 %v1678_v35, %v1137_v36 }
0x11fb   :  { %1144 = vrot.lane.b32.xlu0 %v1140_v37, %s1752_s3 }
0x11fc   :  { %1146 = vrot.lane.b32.xlu1 %v1141_v38, %s1752_s3 }
0x126d   :  { %v1145_v9 = vpop.permute.xlu0 %1144 }
0x126e   :  { %v1147_v41 = vpop.permute.xlu1 %1146  ;;  %v1150_v45 = vadd.f32 %v1145_v9, %v1130_v7 }
0x126f   :  { %v1151_v47 = vadd.f32 %v1147_v41, %v1131_v8 }
0x1270   :  { %1679 = vtanh.f32 %v1150_v45  ;;  %1175 = vst.msk [vmem:[#allocation5] sm:$0x40] %vm1172_vm14, %v1150_v45  ;;  %v1277_v21 = vrot.slane %v1150_v45, 7 }
0x1271   :  { %1681 = vtanh.f32 %v1151_v47  ;;  %1176 = vst.msk [vmem:[#allocation5 + $0x8] sm:$0x40] %vm1172_vm14, %v1151_v47  ;;  %v1278_v24 = vrot.slane %v1151_v47, 7 }
0x127a   :  { %v1680_v48 = vpop.eup %1679 }
0x127b   :  { %v1682_v49 = vpop.eup %1681  ;;  %1156 = vrot.lane.b32.xlu0 %v1680_v48, %s1753_s16 }
0x127c   :  { %1158 = vrot.lane.b32.xlu1 %v1682_v49, %s1753_s16 }
0x12ed   :  { %v1157_v50 = vpop.permute.xlu0 %1156 }
0x12ee   :  { %v1159_v51 = vpop.permute.xlu1 %1158  ;;  %v2007_v52 = vmul.f32 %v1676_v33, %v1157_v50 }
0x12ef   :  { %v2009_v53 = vmul.f32 %v1678_v35, %v1159_v51  ;;  %v1438_v35 = vld [vmem:[%s2120_s4] ss:$0 sm:$0xff]  ;;  %s1754_s4 = smov [#allocation5]  }
0x12f0   :  { %v1177_v54 = vrot.slane %v2007_v52, 6  ;;  %s1386_s19 = sshll.u32 %s1754_s4, 4  ;;  %s1387_s19 = int_to_ptr.vmem [resolvable:$true] %s1386_s19 }
0x12f1   :  { %v1178_v55 = vrot.slane %v2009_v53, 5  ;;  %s1699_s20 = scalar_lea.vmem %s1387_s19, 256  ;;  %p1704_p1 = scmp.lt.s32.totalorder %s1387_s19, %s1387_s19 }
0x12f2   :  { %p1700_p0 = scmp.ne.s32.totalorder %s1387_s19, %s1699_s20  ;;  %p1705_p2 = scmp.lt.s32.totalorder %s1699_s20, %s1699_s20 }
0x12f3   :  { %v1179_v56 = vsel %vm274_vm7, %v1178_v55, %v1177_v54 }
0x12f4   :  { %1180 = vrot.lane.b32.xlu0 %v1179_v56, %s1751_s2  ;;  %p1706_p3 = por %p1705_p2, %p1704_p1 }
0x12f6   :  { %p1707_p4 = pnand %p1706_p3, %p1700_p0 }
0x1366   :  { %v1181_v57 = vpop.permute.xlu0 %1180 }
0x1367   :  { %1526 = vmatmul.mubr.msk.f32.vlgmr.msra.gmra.mrb[8].mxu0 %vm128_vm8, %v1181_v57 }
0x143a   :  { %v1250_v58 = vpop.f32.mrb[8].mxu0 }
0x143b   :  { %v1255_v59 = vrot.slane %v1250_v58, 1  ;;  %v1256_v60 = vrot.slane %v1250_v58, 2  ;;  %v1527_v63 = vpop.f32.mrb[9].mxu0 }
0x143d   :  { %v1259_v0 = vadd.f32 %v1255_v59, %v1853_v17  ;;  %v1260_v1 = vadd.f32 %v1256_v60, %v1851_v13 }
0x143f   :  { %1683 = vtanh.f32 %v1259_v0  ;;  %v1436_v10 = vmul.f32 -1.442695, %v1259_v0  ;;  %v1437_v11 = vmul.f32 -1.442695, %v1260_v1 }
0x1440   :  { %1685 = vtanh.f32 %v1260_v1 }
0x1441   :  { %1687 = vpow2.f32 %v1436_v10 }
0x1442   :  { %1689 = vpow2.f32 %v1437_v11 }
0x1449   :  { %v1684_v2 = vpop.eup %1683 }
0x144a   :  { %v1686_v3 = vpop.eup %1685  ;;  %1285 = vrot.lane.b32.xlu0 %v1684_v2, %s1751_s2 }
0x144b   :  { %1287 = vrot.lane.b32.xlu1 %v1686_v3, %s1751_s2  ;;  %v1688_v12 = vpop.eup %1687 }
0x144c   :  { %v1690_v14 = vpop.eup %1689  ;;  %v1267_v15 = vadd.f32 1.0, %v1688_v12 }
0x144d   :  { %v1268_v16 = vadd.f32 1.0, %v1690_v14 }
0x144e   :  { %1691 = vrcp.f32 %v1267_v15 }
0x144f   :  { %1693 = vrcp.f32 %v1268_v16 }
0x1458   :  { %v1692_v17 = vpop.eup %1691 }
0x1459   :  { %v1694_v18 = vpop.eup %1693  ;;  %v1281_v25 = vmul.f32 %v1692_v17, %v1277_v21 }
0x145a   :  { %v1282_v26 = vmul.f32 %v1694_v18, %v1278_v24 }
0x14bc   :  { %v1286_v13 = vpop.permute.xlu0 %1285 }
0x14bd   :  { %v1288_v6 = vpop.permute.xlu1 %1287  ;;  %v1291_v19 = vmul.f32 %v1692_v17, %v1286_v13 }
0x14be   :  { %v1292_v20 = vmul.f32 %v1694_v18, %v1288_v6 }
0x14bf   :  { %1295 = vrot.lane.b32.xlu0 %v1291_v19, %s1752_s3 }
0x14c0   :  { %1297 = vrot.lane.b32.xlu1 %v1292_v20, %s1752_s3 }
0x1531   :  { %v1296_v29 = vpop.permute.xlu0 %1295 }
0x1532   :  { %v1298_v30 = vpop.permute.xlu1 %1297  ;;  %v1301_v31 = vadd.f32 %v1296_v29, %v1281_v25 }
0x1533   :  { %v1302_v32 = vadd.f32 %v1298_v30, %v1282_v26 }
0x1534   :  { %1695 = vtanh.f32 %v1301_v31  ;;  %1326 = vst.msk [vmem:[#allocation5] sm:$0x80] %vm1323_vm15, %v1301_v31 }
0x1535   :  { %1697 = vtanh.f32 %v1302_v32  ;;  %1327 = vst.msk [vmem:[#allocation5 + $0x8] sm:$0x80] %vm1323_vm15, %v1302_v32 }
0x153e   :  { %v1696_v33 = vpop.eup %1695 }
0x153f   :  { %v1698_v34 = vpop.eup %1697  ;;  %1307 = vrot.lane.b32.xlu0 %v1696_v33, %s1753_s16 }
0x1540   :  { %1309 = vrot.lane.b32.xlu1 %v1698_v34, %s1753_s16 }
0x1543   :  { %262 = vrot.lane.b32.xlu0 %v1868_v46, %s1751_s2 }
0x1544   :  { %1334 = vrot.lane.b32.xlu1 %v1438_v35, %s1753_s16 }
0x1548   :  { %264 = vrot.lane.b32.xlu1 %v1865_v43, %s1751_s2 }
0x15b1   :  { %v1308_v36 = vpop.permute.xlu0 %1307 }
0x15b2   :  { %v1310_v37 = vpop.permute.xlu1 %1309  ;;  %v1313_v39 = vmul.f32 %v1692_v17, %v1308_v36 }
0x15b3   :  { %v1314_v38 = vmul.f32 %v1694_v18, %v1310_v37 }
0x15b5   :  { %v263_v40 = vpop.permute.xlu0 %262 }
0x15b6   :  { %v1335_v7 = vpop.permute.xlu1 %1334  ;;  %269 = vst.msk [vmem:[#allocation3] sm:$0x1] %vm268_vm6, %v263_v40 }
0x15b7   :  { %v1337_v8 = vmul.f32 %v1335_v7, %v1313_v39  ;;  %v1338_v9 = vmul.f32 %v1335_v7, %v1314_v38 }
0x15b9   :  { %v1341_v41 = vrot.slane %v1338_v9, 7  ;;  %1342 = vrot.lane.b32.xlu0 %v1337_v8, %s1751_s2 }
0x15ba   :  { %v265_v45 = vpop.permute.xlu1 %264 }
0x15bb   :  { %270 = vst.msk [vmem:[#allocation3 + $0x8] sm:$0x1] %vm268_vm6, %v265_v45  ;;  %1344 = vrot.lane.b32.xlu1 %v1341_v41, %s1751_s2 }
0x15bd   :  { %412 = vrot.lane.b32.xlu0 %v1890_v22, %s1751_s2 }
0x15bf   :  { %414 = vrot.lane.b32.xlu1 %v1892_v23, %s1751_s2 }
0x15c1   :  { %562 = vrot.lane.b32.xlu0 %v1915_v61, %s1751_s2 }
0x15c3   :  { %564 = vrot.lane.b32.xlu1 %v1917_v62, %s1751_s2 }
0x15c5   :  { %713 = vrot.lane.b32.xlu0 %v1940_v42, %s1751_s2 }
0x15c7   :  { %715 = vrot.lane.b32.xlu1 %v1942_v44, %s1751_s2 }
0x15c9   :  { %864 = vrot.lane.b32.xlu0 %v1964_v27, %s1751_s2 }
0x15cb   :  { %866 = vrot.lane.b32.xlu1 %v1966_v28, %s1751_s2 }
0x15cd   :  { %1015 = vrot.lane.b32.xlu0 %v1988_v4, %s1751_s2 }
0x15cf   :  { %1017 = vrot.lane.b32.xlu1 %v1990_v5, %s1751_s2 }
0x15d1   :  { %1166 = vrot.lane.b32.xlu0 %v2007_v52, %s1751_s2 }
0x15d3   :  { %1168 = vrot.lane.b32.xlu1 %v2009_v53, %s1751_s2 }
0x162b   :  { %v1343_v43 = vpop.permute.xlu0 %1342 }
0x162c   :  { %v1348_v46 = vsel %vm1323_vm15, %v1343_v43, 0.0 }
0x162d   :  { %v1345_v22 = vpop.permute.xlu1 %1344  ;;  %1349 = vadd.xlane.f32.xlu0 %v1348_v46 }
0x162e   :  { %v1351_v23 = vsel %vm268_vm6, %v1345_v22, 0.0 }
0x162f   :  { %1352 = vadd.xlane.f32.xlu1 %v1351_v23  ;;  %v413_v61 = vpop.permute.xlu0 %412 }
0x1630   :  { %419 = vst.msk [vmem:[#allocation3] sm:$0x2] %vm418_vm9, %v413_v61 }
0x1631   :  { %v415_v62 = vpop.permute.xlu1 %414 }
0x1632   :  { %420 = vst.msk [vmem:[#allocation3 + $0x8] sm:$0x2] %vm418_vm9, %v415_v62 }
0x1633   :  { %v563_v42 = vpop.permute.xlu0 %562 }
0x1634   :  { %569 = vst.msk [vmem:[#allocation3] sm:$0x4] %vm568_vm10, %v563_v42 }
0x1635   :  { %v565_v44 = vpop.permute.xlu1 %564 }
0x1636   :  { %570 = vst.msk [vmem:[#allocation3 + $0x8] sm:$0x4] %vm568_vm10, %v565_v44 }
0x1637   :  { %v714_v27 = vpop.permute.xlu0 %713 }
0x1638   :  { %720 = vst.msk [vmem:[#allocation3] sm:$0x8] %vm719_vm11, %v714_v27 }
0x1639   :  { %v716_v28 = vpop.permute.xlu1 %715 }
0x163a   :  { %721 = vst.msk [vmem:[#allocation3 + $0x8] sm:$0x8] %vm719_vm11, %v716_v28 }
0x163b   :  { %v865_v4 = vpop.permute.xlu0 %864 }
0x163c   :  { %871 = vst.msk [vmem:[#allocation3] sm:$0x10] %vm870_vm12, %v865_v4 }
0x163d   :  { %v867_v5 = vpop.permute.xlu1 %866 }
0x163e   :  { %872 = vst.msk [vmem:[#allocation3 + $0x8] sm:$0x10] %vm870_vm12, %v867_v5 }
0x163f   :  { %v1016_v47 = vpop.permute.xlu0 %1015 }
0x1640   :  { %1022 = vst.msk [vmem:[#allocation3] sm:$0x20] %vm1021_vm13, %v1016_v47  ;;  %1319 = vrot.lane.b32.xlu1 %v1314_v38, %s1751_s2 }
0x1641   :  { %v1018_v48 = vpop.permute.xlu1 %1017 }
0x1642   :  { %1023 = vst.msk [vmem:[#allocation3 + $0x8] sm:$0x20] %vm1021_vm13, %v1018_v48 }
0x1643   :  { %1317 = vrot.lane.b32.xlu0 %v1313_v39, %s1751_s2  ;;  %v1167_v49 = vpop.permute.xlu0 %1166 }
0x1644   :  { %1173 = vst.msk [vmem:[#allocation3] sm:$0x40] %vm1172_vm14, %v1167_v49 }
0x1645   :  { %1710 = shalt.err (!%p1707_p4)
}
0x1646   :  { %s1711_s23 = scalar_lea.hbm %s2124_s8, 256 }
0x1647   :  { %p1712_p5 = scmp.ne.s32.totalorder %s2124_s8, %s1711_s23  ;;  %p1715_p6 = scmp.lt.u32.totalorder %s1711_s23, %s2124_s8 }
0x1649   :  { %p1717_p7 = pnand %p1715_p6, %p1712_p5 }
0x164b   :  { %1720 = shalt.err (!%p1717_p7)
}
0x164c   :  { %s1755_s28 = smov 128   ;;  %s1756_s29 = smov 8   ;;  %v1169_v50 = vpop.permute.xlu1 %1168  ;;  %v1439_v51 = vld [vmem:[#allocation2] ss:$0 sm:$0xff]  ;;  %vm1363_vm0 = vcmask 7175   ;;  %vm1365_vm1 = vcmask 0  }
0x164d   :  { %1392 = dma.vmem_to_hbm [thread:$0]  %s1387_s19, 256, %s2124_s8, [#allocation6], %s1755_s28, %s1755_s28, %s1756_s29   ;;  %1174 = vst.msk [vmem:[#allocation3 + $0x8] sm:$0x40] %vm1172_vm14, %v1169_v50 }
0x164e   :  { %s1757_s10 = smov [#allocation3]  }
0x164f   :  { %s1374_s11 = sshll.u32 %s1757_s10, 4  ;;  %s1375_s11 = int_to_ptr.vmem [resolvable:$true] %s1374_s11 }
0x1650   :  { %s1721_s8 = scalar_lea.vmem %s1375_s11, 256  ;;  %p1726_p9 = scmp.lt.s32.totalorder %s1375_s11, %s1375_s11 }
0x1651   :  { %p1722_p8 = scmp.ne.s32.totalorder %s1375_s11, %s1721_s8  ;;  %p1727_p10 = scmp.lt.s32.totalorder %s1721_s8, %s1721_s8 }
0x1653   :  { %p1728_p11 = por %p1727_p10, %p1726_p9 }
0x1655   :  { %p1729_p12 = pnand %p1728_p11, %p1722_p8 }
0x16ba   :  { %v1350_v52 = vpop.xlane.xlu0 %1349 }
0x16bb   :  { %v1361_v53 = vadd.f32 %v1439_v51, %v1350_v52 }
0x16bc   :  { %v1353_v54 = vpop.xlane.xlu1 %1352 }
0x16bd   :  { %1364 = vst.msk [vmem:[%s2122_s6 - $0x7] sm:$0x80] %vm1363_vm0, %v1361_v53  ;;  %v1362_v55 = vadd.f32 %v1439_v51, %v1353_v54 }
0x16be   :  { %v1318_v56 = vpop.permute.xlu0 %1317 }
0x16bf   :  { %1366 = vst.msk [vmem:[%s2122_s6 + $0x1] sm:$0x1] %vm1365_vm1, %v1362_v55 }
0x16c0   :  { %1324 = vst.msk [vmem:[#allocation3] sm:$0x80] %vm1323_vm15, %v1318_v56  ;;  %v1320_v57 = vpop.permute.xlu1 %1319 }
0x16c1   :  { %1325 = vst.msk [vmem:[#allocation3 + $0x8] sm:$0x80] %vm1323_vm15, %v1320_v57 }
0x16c2   :  { %1732 = shalt.err (!%p1729_p12)
}
0x16c3   :  { %s1733_s1 = scalar_lea.hbm %s2123_s7, 256 }
0x16c4   :  { %p1734_p13 = scmp.ne.s32.totalorder %s2123_s7, %s1733_s1  ;;  %p1737_p0 = scmp.lt.u32.totalorder %s1733_s1, %s2123_s7 }
0x16c6   :  { %p1739_p1 = pnand %p1737_p0, %p1734_p13 }
0x16c8   :  { %1742 = shalt.err (!%p1739_p1)
}
0x16c9   :  { %1380 = dma.vmem_to_hbm [thread:$0]  %s1375_s11, 256, %s2123_s7, [#allocation4], %s1755_s28, %s1755_s28, %s1756_s29  }
0x16ca   :  { %1743 = dma.done.wait [#allocation4], 256  }
0x16cb   :  { %1744 = vsyncadd [#allocation4], 4294967040 }
0x16cc   :  { %1745 = dma.done.wait [#allocation6], 256  }
0x16cd   :  { %1746 = vsyncadd [#allocation6], 4294967040 }
0x16ce   :  { %1401 = vsyncpa [#allocation4], 1 }
0x16cf   :  { %1402 = vsyncpa [#allocation6], 1 }

</bundles_post_ra>
